<compile_context>
chip_gen: v5e
topology: v5e:2x2
jax: 0.10.0
libtpu: 0.0.40
codegen_flags: <defaults>
</compile_context>

<pallas_src>
import functools

import jax
import jax.numpy as jnp
from jax.experimental import pallas as pl
from jax.experimental.pallas import tpu as pltpu


def mixprop_kernel(adj_ref, xp_ref, wf_ref, beff_ref, w2_ref, b2_ref, o_ref,
                   *, gdep, alpha):
    """One grid step processes `bt` batches packed along the lane dimension.

    adj_ref : (N, N)                       (1-alpha) * row-normalized adjacency
    xp_ref  : (N, bt*Din)                  inputs, batch packed along lanes
    wf_ref  : (gdep+1, bt*Din, bt*Dout)    block-diag fused weights, W_k = wn @ w1_k
    beff_ref: (1, bt*Dout)                 tiled fused bias  sum_k bn @ w1_k + b1
    w2_ref  : (bt*Dout, bt*Dout)           block-diag second MLP layer
    b2_ref  : (1, bt*Dout)                 tiled second bias
    o_ref   : (N, bt*Dout)                 lane-dense output slab
    """
    cdt = wf_ref.dtype  # MXU-operand dtype (f32 default; bf16 on v6e/v7x)

    def mm(u, v):  # MXU matmul with f32 accumulation
        return jnp.dot(u.astype(cdt), v.astype(cdt),
                       preferred_element_type=jnp.float32)

    xp = xp_ref[...]          # (N, bt*Din), f32
    adj_s = adj_ref[...]      # (N, N), already scaled by (1 - alpha)
    ax = alpha * xp           # hoisted: one VPU multiply total

    # hop-0 contribution: one wide matmul, K = bt*Din
    h = mm(xp, wf_ref[0])     # (N, bt*Dout), f32 accumulator

    # gdep propagation hops: one (N,N)@(N,bt*Din) + one (N,bt*Din)@(bt*Din,bt*Dout)
    a = xp
    for k in range(1, gdep + 1):
        a = ax + mm(adj_s, a)          # mix stays in f32 on the VPU
        h = h + mm(a, wf_ref[k])

    h = jnp.maximum(h + beff_ref[...], 0.0)
    # TODO(synk): nn.Dropout is identity here (inference-mode forward).
    o_ref[...] = (mm(h, w2_ref[...]) + b2_ref[...]).astype(o_ref.dtype)


def _block_diag_tile(w, bt):
    """(d, f) -> (bt*d, bt*f) block-diagonal with bt copies of w."""
    d, f = w.shape[-2:]
    eye = jnp.eye(bt, dtype=w.dtype)
    if w.ndim == 2:
        return jnp.einsum("pq,df->pdqf", eye, w).reshape(bt * d, bt * f)
    k = w.shape[0]
    return jnp.einsum("pq,kdf->kpdqf", eye, w).reshape(k, bt * d, bt * f)


def mixprop_pallas(x, adj, params, *, gdep, alpha, batch_tile=None,
                   matmul_dtype=jnp.float32):
    B, N, Din = x.shape
    Dout = params["wn"].shape[1]
    bt = B if batch_tile is None else batch_tile
    assert B % bt == 0, "batch_tile must divide batch"
    g = B // bt

    # ---- hoisted, grid-invariant preprocessing (runs once, in XLA) ----------
    # adjacency: add identity, row-normalize, fold in (1 - alpha)
    adj_n = adj + jnp.eye(N, dtype=adj.dtype)
    adj_n = adj_n / jnp.sum(adj_n, axis=1, keepdims=True)
    adj_s = (1.0 - float(alpha)) * adj_n

    wn, bn = params["wn"], params["bn"]
    w1, b1 = params["w1"], params["b1"]
    w2, b2 = params["w2"], params["b2"]

    # fuse nconv's weight into the (split) first MLP layer:
    #   h1 = cat_k(a_k @ wn + bn) @ w1 + b1  ==  sum_k a_k @ (wn @ w1_k) + b_eff
    w1_blocks = w1.reshape(gdep + 1, Dout, Dout)                    # w1_k rows
    w_fused = jnp.einsum("de,kef->kdf", wn, w1_blocks)              # (gdep+1, Din, Dout)
    b_eff = jnp.einsum("e,kef->f", bn[0], w1_blocks)[None, :] + b1  # (1, Dout)

    # block-diagonalize per-batch weights so each hop is ONE wide matmul
    wf_bd = _block_diag_tile(w_fused, bt)          # (gdep+1, bt*Din, bt*Dout)
    w2_bd = _block_diag_tile(w2, bt)               # (bt*Dout, bt*Dout)
    beff_t = jnp.tile(b_eff, (1, bt))              # (1, bt*Dout)
    b2_t = jnp.tile(b2, (1, bt))                   # (1, bt*Dout)

    # pack batch along lanes: (B, N, Din) -> (N, B*Din)
    # NOTE: callers chaining MixProp layers should keep this packed layout to
    # avoid the HBM round trips of the transpose/unpack on every call.
    xp = jnp.transpose(x, (1, 0, 2)).reshape(N, B * Din)

    # optional bf16 cast of MXU operands (recommended on v6e/v7x)
    adj_s = adj_s.astype(matmul_dtype)
    wf_bd = wf_bd.astype(matmul_dtype)
    w2_bd = w2_bd.astype(matmul_dtype)

    kernel = functools.partial(mixprop_kernel, gdep=gdep, alpha=float(alpha))

    # advisory cost hint (per whole call)
    flops_per_step = (2 * gdep * N * N * (bt * Din)
                      + 2 * (gdep + 1) * N * (bt * Din) * (bt * Dout)
                      + 2 * N * (bt * Dout) * (bt * Dout))
    ins = (adj_s, xp, wf_bd, beff_t, w2_bd, b2_t)
    bytes_accessed = (sum(int(a.size) * a.dtype.itemsize for a in ins)
                      + N * B * Dout * x.dtype.itemsize)
    cost = pl.CostEstimate(flops=g * flops_per_step, transcendentals=0,
                           bytes_accessed=bytes_accessed)

    out_packed = pl.pallas_call(
        kernel,
        out_shape=jax.ShapeDtypeStruct((N, B * Dout), x.dtype),
        grid_spec=pltpu.PrefetchScalarGridSpec(
            num_scalar_prefetch=0,
            grid=(g,),
            in_specs=[
                pl.BlockSpec((N, N), lambda i: (0, 0)),                 # adj (grid-invariant)
                pl.BlockSpec((N, bt * Din), lambda i: (0, i)),          # packed x, per batch tile
                pl.BlockSpec((gdep + 1, bt * Din, bt * Dout),
                             lambda i: (0, 0, 0)),                      # block-diag fused W_k
                pl.BlockSpec((1, bt * Dout), lambda i: (0, 0)),         # tiled fused bias
                pl.BlockSpec((bt * Dout, bt * Dout), lambda i: (0, 0)),  # block-diag w2
                pl.BlockSpec((1, bt * Dout), lambda i: (0, 0)),         # tiled b2
            ],
            out_specs=pl.BlockSpec((N, bt * Dout), lambda i: (0, i)),
        ),
        compiler_params=pltpu.CompilerParams(
            dimension_semantics=("parallel",)),
        cost_estimate=cost,
    )(adj_s, xp, wf_bd, beff_t, w2_bd, b2_t)

    # (N, B*Dout) -> (B, N, Dout)
    return jnp.transpose(out_packed.reshape(N, B, Dout), (1, 0, 2))


def mixprop_ref(x, adj, params, *, gdep, alpha):
    """Pure-JAX reference mirroring the PyTorch forward (eval mode, unfused)."""
    n = adj.shape[0]
    adj = adj + jnp.eye(n, dtype=adj.dtype)
    adj = adj / jnp.sum(adj, axis=1, keepdims=True)

    def nconv(v):
        return v @ params["wn"] + params["bn"]

    outs = [nconv(x)]
    a = x
    for _ in range(gdep):
        a = alpha * x + (1 - alpha) * jnp.einsum("ij,bjk->bik", adj, a)
        outs.append(nconv(a))
    h = jnp.concatenate(outs, axis=-1)
    h = jnp.maximum(h @ params["w1"] + params["b1"], 0.0)
    return h @ params["w2"] + params["b2"]


def init_params(key, in_dim, out_dim, gdep):
    """Deterministic synthetic weights (shapes match the nn.Module __init__)."""
    ks = jax.random.split(key, 6)
    cat_dim = (gdep + 1) * out_dim
    u = lambda k, shape, fan_in: jax.random.uniform(
        k, shape, jnp.float32, -1.0 / jnp.sqrt(fan_in), 1.0 / jnp.sqrt(fan_in))
    return {
        # stored transposed vs torch (x @ W + b convention)
        "wn": u(ks[0], (in_dim, out_dim), in_dim),
        "bn": u(ks[1], (1, out_dim), in_dim),
        "w1": u(ks[2], (cat_dim, out_dim), cat_dim),
        "b1": u(ks[3], (1, out_dim), cat_dim),
        "w2": u(ks[4], (out_dim, out_dim), out_dim),
        "b2": u(ks[5], (1, out_dim), out_dim),
    }


if __name__ == "__main__":
    B, N, IN_DIM, OUT_DIM = 8, 16, 32, 32
    GDEP, DROPOUT, ALPHA = 2, 0.3, 0.05   # dropout unused at inference
    BT = 4   # bt*Din = 128 lanes per block; grid = 2 "parallel" steps (v7x 2-TC)
             # single-TC v5e/v6e: pass batch_tile=B for grid = 1

    key = jax.random.PRNGKey(0)
    kx, kadj, kp = jax.random.split(key, 3)

    x = jax.random.normal(kx, (B, N, IN_DIM), dtype=jnp.float32)
    adj = jax.random.uniform(kadj, (N, N), dtype=jnp.float32)
    params = init_params(kp, IN_DIM, OUT_DIM, GDEP)

    out = mixprop_pallas(x, adj, params, gdep=GDEP, alpha=ALPHA, batch_tile=BT)
    out = jax.block_until_ready(out)

    ref = mixprop_ref(x, adj, params, gdep=GDEP, alpha=ALPHA)
    assert out.shape == (B, N, OUT_DIM), out.shape
    assert jnp.allclose(out, ref, atol=1e-4, rtol=1e-4), (
        float(jnp.max(jnp.abs(out - ref))))

    print("KERNEL_OK")
</pallas_src>

<mosaic_0001>
module attributes {stable_mosaic.version = 11 : i64} {
  func.func @mixprop_kernel(%arg0: i32, %arg1: memref<16x16xf32, #tpu.memory_space<vmem>>, %arg2: memref<16x128xf32, #tpu.memory_space<vmem>>, %arg3: memref<3x128x128xf32, #tpu.memory_space<vmem>>, %arg4: memref<1x128xf32, #tpu.memory_space<vmem>>, %arg5: memref<128x128xf32, #tpu.memory_space<vmem>>, %arg6: memref<1x128xf32, #tpu.memory_space<vmem>>, %arg7: memref<16x128xf32, #tpu.memory_space<vmem>>) attributes {dimension_semantics = [#tpu.dimension_semantics<parallel>], iteration_bounds = array<i64: 2>, scalar_prefetch = 0 : i64, scratch_operands = 0 : i64, tpu.core_type = #tpu.core_type<tc>, window_params = [{pipeline_mode = #tpu.pipeline_mode<synchronous>, transform_indices = @transform_0, window_bounds = array<i64: 16, 16>}, {transform_indices = @transform_1, window_bounds = array<i64: 16, 128>}, {pipeline_mode = #tpu.pipeline_mode<synchronous>, transform_indices = @transform_2, window_bounds = array<i64: 3, 128, 128>}, {pipeline_mode = #tpu.pipeline_mode<synchronous>, transform_indices = @transform_3, window_bounds = array<i64: 1, 128>}, {pipeline_mode = #tpu.pipeline_mode<synchronous>, transform_indices = @transform_4, window_bounds = array<i64: 128, 128>}, {pipeline_mode = #tpu.pipeline_mode<synchronous>, transform_indices = @transform_5, window_bounds = array<i64: 1, 128>}, {transform_indices = @transform_6, window_bounds = array<i64: 16, 128>}]} {
    %c0 = arith.constant 0 : index
    %c0_0 = arith.constant 0 : index
    %0 = vector.load %arg2[%c0, %c0_0] : memref<16x128xf32, #tpu.memory_space<vmem>>, vector<16x128xf32>
    %c0_1 = arith.constant 0 : index
    %c0_2 = arith.constant 0 : index
    %1 = vector.load %arg1[%c0_1, %c0_2] : memref<16x16xf32, #tpu.memory_space<vmem>>, vector<16x16xf32>
    %cst = arith.constant 5.000000e-02 : f32
    %2 = vector.broadcast %cst : f32 to vector<16x128xf32>
    %3 = arith.mulf %2, %0 : vector<16x128xf32>
    %c0_3 = arith.constant 0 : index
    %c0_4 = arith.constant 0 : index
    %c0_5 = arith.constant 0 : index
    %4 = vector.load %arg3[%c0_3, %c0_4, %c0_5] : memref<3x128x128xf32, #tpu.memory_space<vmem>>, vector<1x128x128xf32>
    %5 = vector.shape_cast %4 : vector<1x128x128xf32> to vector<128x128xf32>
    %cst_6 = arith.constant dense<0.000000e+00> : vector<16x128xf32>
    %6 = tpu.matmul %0, %5, %cst_6 {dimension_numbers = #tpu.dot_dimension_numbers<[1], [0], [0], [1], [0, 0, 1, 1], [], []>} : vector<16x128xf32>, vector<128x128xf32>, vector<16x128xf32> -> vector<16x128xf32>
    %cst_7 = arith.constant dense<0.000000e+00> : vector<16x128xf32>
    %7 = tpu.matmul %1, %0, %cst_7 {dimension_numbers = #tpu.dot_dimension_numbers<[1], [0], [0], [1], [0, 0, 1, 1], [], []>} : vector<16x16xf32>, vector<16x128xf32>, vector<16x128xf32> -> vector<16x128xf32>
    %8 = arith.addf %3, %7 : vector<16x128xf32>
    %c1 = arith.constant 1 : index
    %c0_8 = arith.constant 0 : index
    %c0_9 = arith.constant 0 : index
    %9 = vector.load %arg3[%c1, %c0_8, %c0_9] : memref<3x128x128xf32, #tpu.memory_space<vmem>>, vector<1x128x128xf32>
    %10 = vector.shape_cast %9 : vector<1x128x128xf32> to vector<128x128xf32>
    %cst_10 = arith.constant dense<0.000000e+00> : vector<16x128xf32>
    %11 = tpu.matmul %8, %10, %cst_10 {dimension_numbers = #tpu.dot_dimension_numbers<[1], [0], [0], [1], [0, 0, 1, 1], [], []>} : vector<16x128xf32>, vector<128x128xf32>, vector<16x128xf32> -> vector<16x128xf32>
    %12 = arith.addf %6, %11 : vector<16x128xf32>
    %cst_11 = arith.constant dense<0.000000e+00> : vector<16x128xf32>
    %13 = tpu.matmul %1, %8, %cst_11 {dimension_numbers = #tpu.dot_dimension_numbers<[1], [0], [0], [1], [0, 0, 1, 1], [], []>} : vector<16x16xf32>, vector<16x128xf32>, vector<16x128xf32> -> vector<16x128xf32>
    %14 = arith.addf %3, %13 : vector<16x128xf32>
    %c2 = arith.constant 2 : index
    %c0_12 = arith.constant 0 : index
    %c0_13 = arith.constant 0 : index
    %15 = vector.load %arg3[%c2, %c0_12, %c0_13] : memref<3x128x128xf32, #tpu.memory_space<vmem>>, vector<1x128x128xf32>
    %16 = vector.shape_cast %15 : vector<1x128x128xf32> to vector<128x128xf32>
    %cst_14 = arith.constant dense<0.000000e+00> : vector<16x128xf32>
    %17 = tpu.matmul %14, %16, %cst_14 {dimension_numbers = #tpu.dot_dimension_numbers<[1], [0], [0], [1], [0, 0, 1, 1], [], []>} : vector<16x128xf32>, vector<128x128xf32>, vector<16x128xf32> -> vector<16x128xf32>
    %18 = arith.addf %12, %17 : vector<16x128xf32>
    %c0_15 = arith.constant 0 : index
    %c0_16 = arith.constant 0 : index
    %19 = vector.load %arg4[%c0_15, %c0_16] : memref<1x128xf32, #tpu.memory_space<vmem>>, vector<1x128xf32>
    %20 = vector.broadcast %19 : vector<1x128xf32> to vector<16x128xf32>
    %21 = arith.addf %18, %20 : vector<16x128xf32>
    %cst_17 = arith.constant 0.000000e+00 : f32
    %22 = vector.broadcast %cst_17 : f32 to vector<16x128xf32>
    %23 = arith.maximumf %21, %22 : vector<16x128xf32>
    %c0_18 = arith.constant 0 : index
    %c0_19 = arith.constant 0 : index
    %24 = vector.load %arg5[%c0_18, %c0_19] : memref<128x128xf32, #tpu.memory_space<vmem>>, vector<128x128xf32>
    %cst_20 = arith.constant dense<0.000000e+00> : vector<16x128xf32>
    %25 = tpu.matmul %23, %24, %cst_20 {dimension_numbers = #tpu.dot_dimension_numbers<[1], [0], [0], [1], [0, 0, 1, 1], [], []>} : vector<16x128xf32>, vector<128x128xf32>, vector<16x128xf32> -> vector<16x128xf32>
    %c0_21 = arith.constant 0 : index
    %c0_22 = arith.constant 0 : index
    %26 = vector.load %arg6[%c0_21, %c0_22] : memref<1x128xf32, #tpu.memory_space<vmem>>, vector<1x128xf32>
    %27 = vector.broadcast %26 : vector<1x128xf32> to vector<16x128xf32>
    %28 = arith.addf %25, %27 : vector<16x128xf32>
    %c0_23 = arith.constant 0 : index
    %c0_24 = arith.constant 0 : index
    %29 = vector.load %arg7[%c0_23, %c0_24] : memref<16x128xf32, #tpu.memory_space<vmem>>, vector<16x128xf32>
    tpu.vector_store %arg7[%c0_23, %c0_24], %28 {strides = array<i32>} : memref<16x128xf32, #tpu.memory_space<vmem>>, vector<16x128xf32>,
    return
  }
  func.func @transform_0(%arg0: i32) -> (i32, i32) {
    %c0_i32 = arith.constant 0 : i32
    %c0_i32_0 = arith.constant 0 : i32
    %c0_i32_1 = arith.constant 0 : i32
    return %c0_i32, %c0_i32_0 : i32, i32
  }
  func.func @transform_1(%arg0: i32) -> (i32, i32) {
    %c0_i32 = arith.constant 0 : i32
    %c0_i32_0 = arith.constant 0 : i32
    return %c0_i32, %arg0 : i32, i32
  }
  func.func @transform_2(%arg0: i32) -> (i32, i32, i32) {
    %c0_i32 = arith.constant 0 : i32
    %c0_i32_0 = arith.constant 0 : i32
    %c0_i32_1 = arith.constant 0 : i32
    %c0_i32_2 = arith.constant 0 : i32
    return %c0_i32, %c0_i32_0, %c0_i32_1 : i32, i32, i32
  }
  func.func @transform_3(%arg0: i32) -> (i32, i32) {
    %c0_i32 = arith.constant 0 : i32
    %c0_i32_0 = arith.constant 0 : i32
    %c0_i32_1 = arith.constant 0 : i32
    return %c0_i32, %c0_i32_0 : i32, i32
  }
  func.func @transform_4(%arg0: i32) -> (i32, i32) {
    %c0_i32 = arith.constant 0 : i32
    %c0_i32_0 = arith.constant 0 : i32
    %c0_i32_1 = arith.constant 0 : i32
    return %c0_i32, %c0_i32_0 : i32, i32
  }
  func.func @transform_5(%arg0: i32) -> (i32, i32) {
    %c0_i32 = arith.constant 0 : i32
    %c0_i32_0 = arith.constant 0 : i32
    %c0_i32_1 = arith.constant 0 : i32
    return %c0_i32, %c0_i32_0 : i32, i32
  }
  func.func @transform_6(%arg0: i32) -> (i32, i32) {
    %c0_i32 = arith.constant 0 : i32
    %c0_i32_0 = arith.constant 0 : i32
    return %c0_i32, %arg0 : i32, i32
  }
}

</mosaic_0001>

<bundles_post_ra>
// kernel: tpu_custom_call.1
= control target key start
LH: loop header
LB: loop body
LE: loop exit
PB: predicated region body
PF: predicated region fallthrough
CT: control target
= control target key end

     0   :  { %s1238_s0 = inlined_call_operand.hbm [shape: f32[16,16], index: 0, kind: input, shape index: {}]   ;;  %s1239_s1 = inlined_call_operand.hbm [shape: f32[16,256], index: 1, kind: input, shape index: {}]   ;;  %s1240_s2 = inlined_call_operand.hbm [shape: f32[3,128,128], index: 2, kind: input, shape index: {}]   ;;  %s1241_s3 = inlined_call_operand.vmem [shape: f32[1,128], index: 3, kind: input, shape index: {}]   ;;  %s1242_s4 = inlined_call_operand.hbm [shape: f32[128,128], index: 4, kind: input, shape index: {}]   ;;  %s1243_s5 = inlined_call_operand.vmem [shape: f32[1,128], index: 5, kind: input, shape index: {}]   ;;  %s1244_s6 = inlined_call_operand.hbm [shape: f32[16,256], index: 6, kind: output, shape index: {}]  }
   0x1   :  { %1247 = sst [smem:[#allocation18_spill]] %s1238_s0 }
   0x2   :  { %1248 = sst [smem:[#allocation19_spill]] %s1240_s2 }
   0x3   :  { %1249 = sst [smem:[#allocation20_spill]] %s1242_s4 }
   0x4   :  { %11 = vsyncpa [#allocation3], 0 }
   0x5   :  { %12 = vsyncpa [#allocation6], 0 }
   0x6   :  { %14 = vsyncpa [#allocation6 + $0x1], 0 }
   0x7   :  { %15 = vsyncpa [#allocation9], 0 }
   0x8   :  { %16 = vsyncpa [#allocation4], 0 }
   0x9   :  { %18 = vsyncpa [#allocation4 + $0x1], 0  ;;  %s1028_s21 = smov 0   ;;  %s1030_s22 = smov 0  }
   0xa   :  { %s1032_s23 = smov 0   ;;  %s1034_s24 = smov 0  }
   0xb LB: > { %s1049_s25 = sadd.s32 4294967295, %s982_s24   ;;  %s677_s26 = sadd.s32 4294967294, %s982_s24   ;;  %s982_s24 = sphi %s1034_s24, %s1263_s24   ;;  %s978_s23 = sphi %s1032_s23, %s1267_s23   ;;  %s974_s22 = sphi %s1030_s22, %s1266_s22   ;;  %s970_s21 = sphi %s1028_s21, %s1265_s21  }
   0xc   : > { %s1053_s27 = sadd.s32 1, %s982_s24   ;;  %s52_s28 = sadd.s32 1, %s978_s23 }
   0xd   : > { %1250 = sst [smem:[#allocation16_spill]] %s1053_s27  ;;  %s49_s29 = ssub.s32 %s982_s24, %s1053_s27 }
   0xe   : > { %p59_p0 = scmp.ne.s32.totalorder %s978_s23, %s974_s22  ;;  %p50_p1 = scmp.eq.s32.totalorder %s49_s29, 0 }
   0xf   : > { %p60_p2 = scmp.eq.s32.totalorder %s982_s24, 0  ;;  %p65_p3 = scmp.ne.s32.totalorder %s974_s22, %s970_s21 }
  0x10   : > { %p66_p4 = scmp.eq.s32.totalorder %s1049_s25, 0  ;;  %p173_p7 = scmp.eq.s32.totalorder %s1049_s25, 1 }
  0x11   : > { %s1065_s30 = scalar_select %p50_p1, %s978_s23, %s52_s28  }
  0x12   : > { %p1067_p5 = por %p60_p2, %p59_p0  ;;  %p1073_p6 = por %p66_p4, %p65_p3 }
  0x13   : > { %1251 = sst [smem:[#allocation17_spill]] %s1065_s30  ;;  %p179_p8 = scmp.eq.s32.totalorder %s677_s26, 1 }
  0x14   : > { %p678_p9 = scmp.ge.s32.totalorder %s982_s24, 1  ;;  %p186_p10 = scmp.lt.s32.totalorder %s982_s24, 3 }
  0x15   : > { %p1080_p11 = por %p173_p7, %p59_p0  ;;  %p1084_p12 = por %p179_p8, %p65_p3 }
  0x16   : > { %p1088_p13 = pnand %p678_p9, %p186_p10  ;;  %s1257_s2 = sld [smem:[#allocation19_spill]] }
  0x17   : > { %s984_s16 = smov [#allocation7]   ;;  %p736_p3 = scmp.lt.s32.totalorder %s982_s24, 2 }
  0x18   : > { %p715_p1 = pneg %p1088_p13  ;;  %s213_s17 = sshll.u32 %s984_s16, 4  ;;  %s214_s17 = int_to_ptr.vmem [resolvable:$true] %s213_s17 }
  0x19   : > { %s985_s18 = smov 128   ;;  %s986_s19 = smov 8  }
  0x1a   : > { %p1099_p0 = pnand %p715_p1, %p66_p4  ;;  %p1112_p7 = pnand %p736_p3, %p1067_p5 }
  0x1b   : > { %s1260_s0 = sld [smem:[#allocation18_spill]]  ;;  %s987_s12 = smov [#allocation2]  }
  0x1c   : > { %s211_s14 = sshll.u32 %s1257_s2, 4  ;;  %s199_s13 = sshll.u32 %s987_s12, 4  ;;  %s212_s14 = int_to_ptr.hbm [resolvable:$true] %s211_s14  ;;  %s200_s13 = int_to_ptr.vmem [resolvable:$true] %s199_s13 }
  0x1d   : > { %721 = dma.hbm_to_vmem [thread:$0]  (!%p1099_p0), %s212_s14, 6144, %s214_s17, [#allocation6], %s985_s18, %s985_s18, %s986_s19  }
  0x1e   : > { %s1261_s4 = sld [smem:[#allocation20_spill]]  ;;  %s988_s7 = smov [#allocation8]  }
  0x1f   : > { %s230_s14 = sshll.u32 %s988_s7, 4  ;;  %s247_s17 = sand.u32 1, %s982_s24   ;;  %s231_s14 = int_to_ptr.vmem [resolvable:$true] %s230_s14 }
  0x20   : > { %s249_s26 = sand.u32 1, %s978_s23   ;;  %s684_s28 = sshll.u32 %s982_s24, 3 }
  0x21   : > { %s197_s29 = sshll.u32 %s1260_s0, 4  ;;  %s683_s2 = sshll.u32 %s249_s26, 4  ;;  %s198_s29 = int_to_ptr.hbm [resolvable:$true] %s197_s29 }
  0x22   : > { %718 = dma.hbm_to_vmem [thread:$0]  (!%p1099_p0), %s198_s29, 256, %s200_s13, [#allocation3], %s985_s18, %s985_s18, %s986_s19  }
  0x23   : > { %s255_s0 = scalar_lea.hbm %s1239_s1, %s684_s28  ;;  %s251_s29 = scalar_lea.vmem [#allocation5], %s683_s2 }
  0x24   : > { %s228_s30 = sshll.u32 %s1261_s4, 4  ;;  %s256_s4 = sshll.u32 %s255_s0, 4  ;;  %s229_s30 = int_to_ptr.hbm [resolvable:$true] %s228_s30  ;;  %s257_s4 = int_to_ptr.hbm [resolvable:$true] %s256_s4 }
  0x25   : > { %724 = dma.hbm_to_vmem [thread:$0]  (!%p1099_p0), %s229_s30, 2048, %s231_s14, [#allocation9], %s985_s18, %s985_s18, %s986_s19  }
  0x26   : > { %s258_s13 = sshll.u32 %s251_s29, 4  ;;  %s248_s7 = scalar_lea.sflag [#allocation6], %s247_s17  ;;  %s259_s13 = int_to_ptr.vmem [resolvable:$true] %s258_s13 }
  0x27   : > { %s874_s27 = sshra.s32 %s257_s4, 4  ;;  %p878_p8 = pneg %p1112_p7  ;;  %s875_s27 = int_to_ptr.hbm [resolvable:$true] %s874_s27 }
  0x28   : > { %s876_s15 = scalar_lea.hbm %s875_s27, 16  ;;  %s881_s26 = scalar_lea.hbm %s1239_s1, 32 }
  0x29   : > { %p877_p5 = scmp.ne.s32.totalorder %s875_s27, %s876_s15  ;;  %p882_p1 = scmp.lt.s32.totalorder %s875_s27, %s1239_s1 }
  0x2a   : > { %p883_p0 = scmp.lt.s32.totalorder %s881_s26, %s876_s15 }
  0x2b   : > { %p879_p9 = pnand %p878_p8, %p877_p5 }
  0x2c   : > { %p884_p3 = por %p883_p0, %p882_p1 }
  0x2d   : > { %p880_p10 = pneg %p879_p9 }
  0x2f   : > { %p885_p2 = pnand %p884_p3, %p880_p10 }
  0x31   : > { %888 = shalt.err (!%p885_p2)
}
  0x32   : > { %s989_s0 = smov 256   ;;  %270 = sbr.rel (%p1088_p13) target bundleno = 620 (0x26c), region = 44 }
  0x33   : > { %728 = dma.hbm_to_vmem [thread:$0]  (!%p1112_p7), %s257_s4, 256, %s259_s13, %s248_s7, %s989_s0, %s985_s18, %s986_s19  }
  0x37   : > { %949 = dma.done.wait (%p66_p4), [#allocation3], 256  }
  0x38   : > { %951 = vsyncadd (%p66_p4), [#allocation3], 4294967040  ;;  %s277_s27 = sand.u32 1, %s1049_s25   ;;  %s279_s17 = sand.u32 1, %s974_s22  }
  0x39   : > { %s1160_s20 = sshll.u32 %s279_s17, 4  ;;  %s278_s4 = scalar_lea.sflag [#allocation6], %s277_s27 }
  0x3a   : > { %s281_s18 = scalar_lea.vmem [#allocation5], %s1160_s20 }
  0x3b   : > { %953 = dma.done.wait (%p1073_p6), %s278_s4, 256  }
  0x3c   : > { %955 = vsyncadd (%p1073_p6), %s278_s4, 4294967040 }
  0x3d   : > { %957 = dma.done.wait (%p66_p4), [#allocation6], 6144  }
  0x3e   : > { %959 = vsyncadd (%p66_p4), [#allocation6], 4294961152 }
  0x3f   : > { %961 = dma.done.wait (%p66_p4), [#allocation9], 2048  }
  0x40   : > { %963 = vsyncadd (%p66_p4), [#allocation9], 4294965248  ;;  %v1175_v0 = vld [vmem:[%s281_s18 + $0x8] sm:$0xff]  ;;  %v1177_v1 = vld [vmem:[%s281_s18] sm:$0xff]  ;;  %vm343_vm0 = vcmask 130048   ;;  %s696_s16 = sshll.u32 %s1049_s25, 3 }
  0x41   : > { %364 = vmatpush.msra.mxu0 %v1175_v0  ;;  %v1180_v2 = vld [vmem:[#allocation2] sm:$0xff]  ;;  %v342_v3 = vld [vmem:[#allocation7 + $0x78] sm:$0xff]  ;;  %v340_v6 = vld [vmem:[#allocation7 + $0x68] sm:$0xff]  ;;  %v325_v41 = vmul.f32 0.05, %v1177_v1  ;;  %s569_s7 = scalar_lea.hbm %s1244_s6, %s696_s16  ;;  %s320_s15 = scalar_lea.vmem [#allocation10], %s1160_s20 }
  0x42   : > { %v341_v4 = vld [vmem:[#allocation7 + $0x70] sm:$0xff]  ;;  %415 = vmatpush.msra.mxu2 %v342_v3  ;;  %v391_v5 = vld [vmem:[#allocation7 + $0xf8] sm:$0xff]  ;;  %v389_v8 = vld [vmem:[#allocation7 + $0xe8] sm:$0xff]  ;;  %v326_v45 = vmul.f32 0.05, %v1175_v0  ;;  %s570_s30 = sshll.u32 %s320_s15, 4  ;;  %s571_s30 = int_to_ptr.vmem [resolvable:$true] %s570_s30 }
  0x43   : > { %365 = vmatpush.msra.mxu0 %v1177_v1  ;;  %392 = vmatpush.msra.mxu1 %v391_v5  ;;  %v390_v7 = vld [vmem:[#allocation7 + $0xf0] sm:$0xff]  ;;  %v339_v9 = vld [vmem:[#allocation7 + $0x60] sm:$0xff]  ;;  %v338_v11 = vld [vmem:[#allocation7 + $0x58] sm:$0xff]  ;;  %s572_s14 = sshll.u32 %s569_s7, 4  ;;  %s559_s26 = scalar_lea.sflag [#allocation4], %s279_s17  ;;  %s573_s14 = int_to_ptr.hbm [resolvable:$true] %s572_s14 }
  0x44   : > { %691 = vmatmul.msk.f32.vlgmr.msra.gmra.mxu0 %vm343_vm0, %v1180_v2  ;;  %416 = vmatpush.msra.mxu2 %v341_v4  ;;  %v388_v10 = vld [vmem:[#allocation7 + $0xe0] sm:$0xff]  ;;  %v387_v12 = vld [vmem:[#allocation7 + $0xd8] sm:$0xff]  ;;  %v337_v14 = vld [vmem:[#allocation7 + $0x50] sm:$0xff]  ;;  %s918_s12 = sshra.s32 %s573_s14, 4  ;;  %s924_s27 = scalar_lea.hbm %s1244_s6, 32  ;;  %s919_s12 = int_to_ptr.hbm [resolvable:$true] %s918_s12 }
  0x45   : > { %393 = vmatpush.msra.mxu1 %v390_v7  ;;  %v1185_v13 = vld [vmem:[#allocation2 + $0x8] sm:$0xff]  ;;  %v386_v15 = vld [vmem:[#allocation7 + $0xd0] sm:$0xff]  ;;  %v336_v16 = vld [vmem:[#allocation7 + $0x48] sm:$0xff]  ;;  %s920_s25 = scalar_lea.hbm %s919_s12, 16  ;;  %p925_p2 = scmp.lt.s32.totalorder %s919_s12, %s1244_s6 }
  0x46   : > { %417 = vmatpush.msra.mxu2 %v340_v6  ;;  %v385_v17 = vld [vmem:[#allocation7 + $0xc8] sm:$0xff]  ;;  %v335_v18 = vld [vmem:[#allocation7 + $0x40] sm:$0xff]  ;;  %v334_v20 = vld [vmem:[#allocation7 + $0x38] sm:$0xff]  ;;  %p921_p4 = scmp.ne.s32.totalorder %s919_s12, %s920_s25  ;;  %p926_p7 = scmp.lt.s32.totalorder %s924_s27, %s920_s25 }
  0x47   : > { %394 = vmatpush.msra.mxu1 %v389_v8  ;;  %v384_v19 = vld [vmem:[#allocation7 + $0xc0] sm:$0xff]  ;;  %v383_v21 = vld [vmem:[#allocation7 + $0xb8] sm:$0xff]  ;;  %v333_v22 = vld [vmem:[#allocation7 + $0x30] sm:$0xff] }
  0x48   : > { %418 = vmatpush.msra.mxu2 %v339_v9  ;;  %v382_v23 = vld [vmem:[#allocation7 + $0xb0] sm:$0xff]  ;;  %v332_v24 = vld [vmem:[#allocation7 + $0x28] sm:$0xff]  ;;  %v331_v26 = vld [vmem:[#allocation7 + $0x20] sm:$0xff]  ;;  %p922_p6 = pnand %p921_p4, %p1080_p11  ;;  %p927_p5 = por %p926_p7, %p925_p2 }
  0x49   : > { %395 = vmatpush.msra.mxu1 %v388_v10  ;;  %v381_v25 = vld [vmem:[#allocation7 + $0xa8] sm:$0xff]  ;;  %v380_v27 = vld [vmem:[#allocation7 + $0xa0] sm:$0xff]  ;;  %v330_v28 = vld [vmem:[#allocation7 + $0x18] sm:$0xff] }
  0x4a   : > { %419 = vmatpush.msra.mxu2 %v338_v11  ;;  %v379_v29 = vld [vmem:[#allocation7 + $0x98] sm:$0xff]  ;;  %v329_v30 = vld [vmem:[#allocation7 + $0x10] sm:$0xff]  ;;  %v328_v32 = vld [vmem:[#allocation7 + $0x8] sm:$0xff]  ;;  %p923_p13 = pneg %p922_p6 }
  0x4b   : > { %396 = vmatpush.msra.mxu1 %v387_v12  ;;  %v378_v31 = vld [vmem:[#allocation7 + $0x90] sm:$0xff]  ;;  %v327_v33 = vld [vmem:[#allocation7] sm:$0xff]  ;;  %v377_v34 = vld [vmem:[#allocation7 + $0x88] sm:$0xff] }
  0x4c   : > { %692 = vmatmul.msk.f32.gmra.mxu0 %vm343_vm0, %v1185_v13  ;;  %420 = vmatpush.msra.mxu2 %v337_v14  ;;  %v376_v35 = vld [vmem:[#allocation7 + $0x80] sm:$0xff]  ;;  %v479_v36 = vld [vmem:[#allocation7 + $0x178] sm:$0xff]  ;;  %v478_v37 = vld [vmem:[#allocation7 + $0x170] sm:$0xff]  ;;  %p928_p8 = pnand %p927_p5, %p923_p13 }
  0x4d   : > { %397 = vmatpush.msra.mxu1 %v386_v15  ;;  %480 = vmatpush.msrb.mxu0 %v479_v36  ;;  %v477_v38 = vld [vmem:[#allocation7 + $0x168] sm:$0xff]  ;;  %v476_v39 = vld [vmem:[#allocation7 + $0x160] sm:$0xff]  ;;  %v475_v40 = vld [vmem:[#allocation7 + $0x158] sm:$0xff] }
  0x4e   : > { %421 = vmatpush.msra.mxu2 %v336_v16  ;;  %v474_v42 = vld [vmem:[#allocation7 + $0x150] sm:$0xff]  ;;  %v473_v48 = vld [vmem:[#allocation7 + $0x148] sm:$0xff]  ;;  %v472_v49 = vld [vmem:[#allocation7 + $0x140] sm:$0xff] }
  0x4f   : > { %398 = vmatpush.msra.mxu1 %v385_v17  ;;  %481 = vmatpush.msrb.mxu0 %v478_v37  ;;  %v471_v50 = vld [vmem:[#allocation7 + $0x138] sm:$0xff]  ;;  %v470_v51 = vld [vmem:[#allocation7 + $0x130] sm:$0xff]  ;;  %v469_v52 = vld [vmem:[#allocation7 + $0x128] sm:$0xff] }
  0x50   : > { %422 = vmatpush.msra.mxu2 %v335_v18  ;;  %v468_v53 = vld [vmem:[#allocation7 + $0x120] sm:$0xff]  ;;  %v467_v54 = vld [vmem:[#allocation7 + $0x118] sm:$0xff]  ;;  %v466_v55 = vld [vmem:[#allocation7 + $0x110] sm:$0xff] }
  0x51   : > { %399 = vmatpush.msra.mxu1 %v384_v19  ;;  %482 = vmatpush.msrb.mxu0 %v477_v38  ;;  %v465_v56 = vld [vmem:[#allocation7 + $0x108] sm:$0xff]  ;;  %v464_v57 = vld [vmem:[#allocation7 + $0x100] sm:$0xff]  ;;  %v528_v58 = vld [vmem:[#allocation8 + $0x78] sm:$0xff] }
  0x52   : > { %423 = vmatpush.msra.mxu2 %v334_v20  ;;  %v527_v59 = vld [vmem:[#allocation8 + $0x70] sm:$0xff]  ;;  %v526_v60 = vld [vmem:[#allocation8 + $0x68] sm:$0xff]  ;;  %v525_v61 = vld [vmem:[#allocation8 + $0x60] sm:$0xff] }
  0x53   : > { %400 = vmatpush.msra.mxu1 %v383_v21  ;;  %483 = vmatpush.msrb.mxu0 %v476_v39  ;;  %v524_v62 = vld [vmem:[#allocation8 + $0x58] sm:$0xff]  ;;  %v523_v63 = vld [vmem:[#allocation8 + $0x50] sm:$0xff]  ;;  %v518_v4 = vld [vmem:[#allocation8 + $0x28] sm:$0xff] }
  0x54   : > { %424 = vmatpush.msra.mxu2 %v333_v22  ;;  %v519_v3 = vld [vmem:[#allocation8 + $0x30] sm:$0xff]  ;;  %v517_v5 = vld [vmem:[#allocation8 + $0x20] sm:$0xff]  ;;  %v516_v10 = vld [vmem:[#allocation8 + $0x18] sm:$0xff] }
  0x55   : > { %401 = vmatpush.msra.mxu1 %v382_v23  ;;  %484 = vmatpush.msrb.mxu0 %v475_v40  ;;  %v515_v11 = vld [vmem:[#allocation8 + $0x10] sm:$0xff]  ;;  %v514_v12 = vld [vmem:[#allocation8 + $0x8] sm:$0xff] }
  0x56   : > { %425 = vmatpush.msra.mxu2 %v332_v24  ;;  %v782_v17 = vld [vmem:[%s1241_s3] ss:$0 sm:$0xff] }
  0x57   : > { %402 = vmatpush.msra.mxu1 %v381_v25  ;;  %485 = vmatpush.msrb.mxu0 %v474_v42 }
  0x58   : > { %426 = vmatpush.msra.mxu2 %v331_v26 }
  0x59   : > { %403 = vmatpush.msra.mxu1 %v380_v27  ;;  %486 = vmatpush.msrb.mxu0 %v473_v48 }
  0x5a   : > { %427 = vmatpush.msra.mxu2 %v330_v28 }
  0x5b   : > { %404 = vmatpush.msra.mxu1 %v379_v29  ;;  %487 = vmatpush.msrb.mxu0 %v472_v49  ;;  %v783_v29 = vld [vmem:[%s1243_s5] ss:$0 sm:$0xff] }
  0x5c   : > { %428 = vmatpush.msra.mxu2 %v329_v30 }
  0x5d   : > { %405 = vmatpush.msra.mxu1 %v378_v31  ;;  %488 = vmatpush.msrb.mxu0 %v471_v50 }
  0x5e   : > { %429 = vmatpush.msra.mxu2 %v328_v32 }
  0x5f   : > { %406 = vmatpush.msra.mxu1 %v377_v34  ;;  %489 = vmatpush.msrb.mxu0 %v470_v51 }
  0x60   : > { %430 = vmatpush.msra.mxu2 %v327_v33 }
  0x61   : > { %431 = vmatmul.f32.vlgmr.msra.gmra.mxu2 %v1177_v1  ;;  %407 = vmatpush.msra.mxu1 %v376_v35  ;;  %v521_v1 = vld [vmem:[#allocation8 + $0x40] sm:$0xff] }
  0x62   : > { %490 = vmatpush.msrb.mxu0 %v469_v52 }
  0x64   : > { %491 = vmatpush.msrb.mxu0 %v468_v53 }
  0x66   : > { %492 = vmatpush.msrb.mxu0 %v467_v54 }
  0x68   : > { %493 = vmatpush.msrb.mxu0 %v466_v55 }
  0x69   : > { %434 = vmatmul.f32.gmra.mxu2 %v1175_v0  ;;  %v522_v0 = vld [vmem:[#allocation8 + $0x48] sm:$0xff] }
  0x6a   : > { %494 = vmatpush.msrb.mxu0 %v465_v56 }
  0x6c   : > { %495 = vmatpush.msrb.mxu0 %v464_v57 }
  0xc1   : > { %v367_v43 = vpop.f32.mrf.mxu0 }
  0xc2   : > { %v373_v44 = vadd.f32 %v367_v43, %v325_v41 }
  0xc4   : > { %408 = vmatmul.f32.vlgmr.msra.gmra.mxu1 %v373_v44 }
  0xc9   : > { %v370_v46 = vpop.f32.mrf.mxu0 }
  0xca   : > { %v374_v47 = vadd.f32 %v370_v46, %v326_v45 }
  0xcc   : > { %411 = vmatmul.f32.gmra.mxu1 %v374_v47  ;;  %452 = vmatpush.msra.mxu3 %v374_v47 }
  0xce   : > { %453 = vmatpush.msra.mxu3 %v373_v44 }
  0xcf   : > { %693 = vmatmul.msk.f32.vlgmr.msra.gmra.mxu3 %vm343_vm0, %v1180_v2  ;;  %v520_v2 = vld [vmem:[#allocation8 + $0x38] sm:$0xff] }
  0xd0   : > { %533 = vmatpush.msrb.mxu3 %v528_v58 }
  0xd2   : > { %534 = vmatpush.msrb.mxu3 %v527_v59 }
  0xd4   : > { %535 = vmatpush.msrb.mxu3 %v526_v60 }
  0xd6   : > { %536 = vmatpush.msrb.mxu3 %v525_v61 }
  0xd7   : > { %694 = vmatmul.msk.f32.gmra.mxu3 %vm343_vm0, %v1185_v13  ;;  %v513_v13 = vld [vmem:[#allocation8] sm:$0xff] }
  0xd8   : > { %537 = vmatpush.msrb.mxu3 %v524_v62 }
  0xda   : > { %538 = vmatpush.msrb.mxu3 %v523_v63 }
  0xdc   : > { %539 = vmatpush.msrb.mxu3 %v522_v0 }
  0xde   : > { %540 = vmatpush.msrb.mxu3 %v521_v1 }
  0xe0   : > { %541 = vmatpush.msrb.mxu3 %v520_v2 }
  0xe2   : > { %542 = vmatpush.msrb.mxu3 %v519_v3 }
  0xe4   : > { %543 = vmatpush.msrb.mxu3 %v518_v4  ;;  %v432_v15 = vpop.f32.mrf.mxu2 }
  0xe6   : > { %544 = vmatpush.msrb.mxu3 %v517_v5 }
  0xe8   : > { %545 = vmatpush.msrb.mxu3 %v516_v10 }
  0xea   : > { %546 = vmatpush.msrb.mxu3 %v515_v11 }
  0xec   : > { %547 = vmatpush.msrb.mxu3 %v514_v12  ;;  %v435_v22 = vpop.f32.mrf.mxu2 }
  0xee   : > { %548 = vmatpush.msrb.mxu3 %v513_v13 }
 0x141   : > { %v409_v14 = vpop.f32.mrf.mxu1 }
 0x142   : > { %v433_v16 = vadd.f32 %v432_v15, %v409_v14 }
 0x149   : > { %v412_v21 = vpop.f32.mrf.mxu1 }
 0x14a   : > { %v436_v24 = vadd.f32 %v435_v22, %v412_v21 }
 0x152   : > { %v455_v6 = vpop.f32.mrf.mxu3 }
 0x153   : > { %v461_v7 = vadd.f32 %v455_v6, %v325_v41 }
 0x155   : > { %496 = vmatmul.f32.vlgmr.msrb.gmra.mxu0 %v461_v7 }
 0x15a   : > { %v458_v8 = vpop.f32.mrf.mxu3 }
 0x15b   : > { %v462_v9 = vadd.f32 %v458_v8, %v326_v45 }
 0x15d   : > { %499 = vmatmul.f32.gmra.mxu0 %v462_v9 }
 0x1d2   : > { %v497_v18 = vpop.f32.mrf.mxu0 }
 0x1d3   : > { %v503_v19 = vadd.f32 %v497_v18, %v433_v16 }
 0x1d5   : > { %v509_v20 = vadd.f32 %v782_v17, %v503_v19 }
 0x1d7   : > { %v511_v23 = vmax.f32 %v509_v20, 0.0 }
 0x1d9   : > { %549 = vmatmul.f32.vlgmr.msrb.gmra.mxu3 %v511_v23 }
 0x1da   : > { %v500_v25 = vpop.f32.mrf.mxu0 }
 0x1db   : > { %v504_v26 = vadd.f32 %v500_v25, %v436_v24 }
 0x1dd   : > { %v510_v27 = vadd.f32 %v782_v17, %v504_v26 }
 0x1df   : > { %v512_v28 = vmax.f32 %v510_v27, 0.0 }
 0x1e1   : > { %552 = vmatmul.f32.gmra.mxu3 %v512_v28 }
 0x25c   : > { %v550_v30 = vpop.f32.mrf.mxu3 }
 0x25d   : > { %v551_v31 = vadd.f32 %v783_v29, %v550_v30 }
 0x25f   : > { %556 = vst [vmem:[%s320_s15] sm:$0xff] %v551_v31 }
 0x264   : > { %v553_v32 = vpop.f32.mrf.mxu3 }
 0x265   : > { %v554_v33 = vadd.f32 %v783_v29, %v553_v32 }
 0x267   : > { %557 = vst [vmem:[%s320_s15 + $0x8] sm:$0xff] %v554_v33 }
 0x268   : > { %931 = shalt.err (!%p928_p8)
}
 0x269   : > { %s990_s17 = smov 128   ;;  %s991_s18 = smov 256  }
 0x26a   : > { %s992_s8 = smov 8  }
 0x26b   : > { %713 = dma.vmem_to_hbm [thread:$0]  (%p1080_p11), %s571_s30, 256, %s573_s14, %s559_s26, %s990_s17, %s991_s18, %s992_s8  }
 0x26c PF: > { %s587_s11 = sand.u32 1, %s970_s21   ;;  %p1262_p9 = scmp.ge.s32.totalorder %s982_s24, 2 }
 0x26d   : > { %s588_s19 = scalar_lea.sflag [#allocation4], %s587_s11 }
 0x26e   : > { %p730_p10 = pnand %p1262_p9, %p1084_p12 }
 0x270   : > { %p731_p1 = pneg %p730_p10 }
 0x272   : > { %965 = dma.done.wait (%p731_p1), %s588_s19, 256  }
 0x273   : > { %967 = vsyncadd (%p731_p1), %s588_s19, 4294967040  ;;  %s1263_s24 = sld [smem:[#allocation16_spill]]  ;;  %s1265_s21 = smov %s974_s22 }
 0x274   : > { %s1264_s2 = sld [smem:[#allocation17_spill]]  ;;  %s1266_s22 = smov %s978_s23 }
 0x279   : > { %p21_p0 = scmp.ge.s32.totalorder %s1263_s24, 4  }
 0x27a   : > { %s1267_s23 = smov %s1264_s2 }
 0x27b   :  { %23 = sbr.rel (!%p21_p0) target bundleno = 11 (0xb), region = 104 }
 0x280   :  { %594 = vsyncpa [#allocation3], 1 }
 0x281   :  { %596 = vsyncpa [#allocation3 + $0x1], 1 }
 0x282   :  { %597 = vsyncpa [#allocation6], 1 }
 0x283   :  { %599 = vsyncpa [#allocation6 + $0x1], 1 }
 0x284   :  { %600 = vsyncpa [#allocation9], 1 }
 0x285   :  { %601 = vsyncpa [#allocation4], 1 }
 0x286   :  { %603 = vsyncpa [#allocation4 + $0x1], 1 }

</bundles_post_ra>
